<compile_context>
chip_gen: v7x
topology: tpu7x:2x2x1
jax: 0.10.0
libtpu: 0.0.40
codegen_flags: <defaults>
</compile_context>

<pallas_src>
import jax
import jax.numpy as jnp
from jax.experimental import pallas as pl
from jax.experimental.pallas import tpu as pltpu


def lambda_kernel(x_ref, w_ref, b_ref, eps_ref, out_ref):
    """Fused Lambda forward for one batch tile.

    x_ref   : (tm, H)   cell_output tile
    w_ref   : (H, 2L)   [W_mean.T | W_logvar.T] packed along lanes (resident)
    b_ref   : (1, 2L)   [b_mean   | b_logvar]                     (resident)
    eps_ref : (tm, L)   reparameterization noise tile
    out_ref : (tm, 3L)  lane-dense output slab [mean | logvar | z]
    """
    L = eps_ref.shape[-1]
    x = x_ref[...]                                                 # (tm, H)

    # Single fused GEMM on the MXU (f32 accumulation regardless of in dtype).
    ml = jnp.dot(x, w_ref[...], preferred_element_type=jnp.float32)
    ml = ml + b_ref[...].astype(jnp.float32)                       # (tm, 2L)

    mean = ml[:, :L]
    logvar = ml[:, L:]
    std = jnp.exp(0.5 * logvar)                                    # EUP, f32
    z = eps_ref[...].astype(jnp.float32) * std + mean              # (tm, L)

    # Two stores only: ml goes out verbatim, z is appended.
    out_ref[:, :2 * L] = ml.astype(out_ref.dtype)
    out_ref[:, 2 * L:] = z.astype(out_ref.dtype)


def prepare_lambda_params(w_mean, b_mean, w_logvar, b_logvar,
                          param_dtype=jnp.float32):
    """Hoisted parameter prep (do ONCE at init, not per forward call).

    w_* : (L, H) PyTorch nn.Linear layout; b_* : (L,)
    Returns packed_w (H, 2L) and packed_b (1, 2L).
    """
    wm = jnp.asarray(w_mean, param_dtype)      # (L, H)
    wl = jnp.asarray(w_logvar, param_dtype)    # (L, H)
    packed_w = jnp.concatenate([wm.T, wl.T], axis=-1)               # (H, 2L)
    packed_b = jnp.concatenate(
        [jnp.asarray(b_mean, param_dtype),
         jnp.asarray(b_logvar, param_dtype)]).reshape(1, -1)        # (1, 2L)
    return packed_w, packed_b


def _choose_tm(B, cap=4096):
    """Pick a batch tile that divides B (multiple of 8), preferring >=2 grid
    steps (both v7x TensorCores busy) and large tiles for big batches."""
    if B <= 8 or B % 8:
        return B                          # single full-batch block
    limit = min(cap, B // 2)
    d = limit - (limit % 8)
    while d >= 8:
        if B % d == 0:
            return d
        d -= 8
    return B                              # no nice divisor; single block


@jax.jit
def lambda_forward(cell_output, eps, packed_w, packed_b):
    """cell_output: (B, H); eps: (B, L); packed_w: (H, 2L); packed_b: (1, 2L).

    Returns (z, mean, logvar). Eval mode of the PyTorch module corresponds to
    using `mean` only.
    """
    B, H = cell_output.shape
    L = eps.shape[-1]
    out_dtype = cell_output.dtype

    tm = _choose_tm(B)
    n_blocks = B // tm

    isz = jnp.dtype(cell_output.dtype).itemsize
    wsz = jnp.dtype(packed_w.dtype).itemsize
    osz = jnp.dtype(out_dtype).itemsize
    cost = pl.CostEstimate(
        flops=2 * B * H * 2 * L + 4 * B * L,
        transcendentals=B * L,
        bytes_accessed=(B * H + B * L) * isz
                       + (H * 2 * L + 2 * L) * wsz
                       + B * 3 * L * osz,
    )

    out = pl.pallas_call(
        lambda_kernel,
        out_shape=jax.ShapeDtypeStruct((B, 3 * L), out_dtype),
        grid=(n_blocks,),
        in_specs=[
            pl.BlockSpec((tm, H), lambda i: (i, 0)),        # x tile
            pl.BlockSpec((H, 2 * L), lambda i: (0, 0)),     # packed W (resident)
            pl.BlockSpec((1, 2 * L), lambda i: (0, 0)),     # packed b (resident)
            pl.BlockSpec((tm, L), lambda i: (i, 0)),        # eps tile
        ],
        out_specs=pl.BlockSpec((tm, 3 * L), lambda i: (i, 0)),
        compiler_params=pltpu.CompilerParams(
            dimension_semantics=("parallel",)),
        cost_estimate=cost,
    )(cell_output, packed_w, packed_b, eps)

    # Slab layout is [mean | logvar | z]; slicing happens inside the same jit.
    mean = out[:, :L]
    logvar = out[:, L:2 * L]
    z = out[:, 2 * L:]
    return z, mean, logvar


# ----------------------------------------------------------------------------
# Init helpers matching the PyTorch module + pure-JAX reference.
# ----------------------------------------------------------------------------
def xavier_uniform(key, shape):
    # shape = (fan_out, fan_in) a la nn.Linear.weight
    fan_out, fan_in = shape
    bound = (6.0 / (fan_in + fan_out)) ** 0.5
    return jax.random.uniform(key, shape, jnp.float32, -bound, bound)


def linear_bias_init(key, fan_in, fan_out):
    # PyTorch nn.Linear default bias init: U(-1/sqrt(fan_in), 1/sqrt(fan_in))
    bound = 1.0 / (fan_in ** 0.5)
    return jax.random.uniform(key, (fan_out,), jnp.float32, -bound, bound)


def reference_forward(x, w_mean, b_mean, w_logvar, b_logvar, eps):
    mean = x @ w_mean.T + b_mean
    logvar = x @ w_logvar.T + b_logvar
    z = eps * jnp.exp(0.5 * logvar) + mean
    return z, mean, logvar


if __name__ == "__main__":
    hidden_size = 32
    latent_length = 16

    key = jax.random.PRNGKey(0)
    k_wm, k_bm, k_wl, k_bl, k_data = jax.random.split(key, 5)

    w_mean = xavier_uniform(k_wm, (latent_length, hidden_size))
    b_mean = linear_bias_init(k_bm, hidden_size, latent_length)
    w_logvar = xavier_uniform(k_wl, (latent_length, hidden_size))
    b_logvar = linear_bias_init(k_bl, hidden_size, latent_length)

    # Parameter packing/transposing is done once, outside the hot path.
    packed_w, packed_b = prepare_lambda_params(w_mean, b_mean,
                                               w_logvar, b_logvar)

    # Exercise both the single-block path (B=8) and the multi-block /
    # megacore path (B=64 -> tm=32, 2 grid steps).
    for batch in (8, 64):
        k_data, k_x, k_eps = jax.random.split(k_data, 3)
        cell_output = jax.random.normal(k_x, (batch, hidden_size), jnp.float32)
        # eps ~ N(0,1): generated outside the kernel (deterministic PRNGKey),
        # matching torch.randn_like in the module's training path.
        eps = jax.random.normal(k_eps, (batch, latent_length), jnp.float32)

        z, mean, logvar = lambda_forward(cell_output, eps, packed_w, packed_b)
        jax.block_until_ready((z, mean, logvar))

        z_ref, mean_ref, logvar_ref = reference_forward(
            cell_output, w_mean, b_mean, w_logvar, b_logvar, eps)
        assert jnp.allclose(z, z_ref, atol=1e-5, rtol=1e-5)
        assert jnp.allclose(mean, mean_ref, atol=1e-5, rtol=1e-5)
        assert jnp.allclose(logvar, logvar_ref, atol=1e-5, rtol=1e-5)

    print("KERNEL_OK")
</pallas_src>

<mosaic_0001>
module attributes {stable_mosaic.version = 11 : i64} {
  func.func @lambda_kernel(%arg0: i32, %arg1: memref<8x32xf32, #tpu.memory_space<vmem>>, %arg2: memref<32x32xf32, #tpu.memory_space<vmem>>, %arg3: memref<1x32xf32, #tpu.memory_space<vmem>>, %arg4: memref<8x16xf32, #tpu.memory_space<vmem>>, %arg5: memref<8x48xf32, #tpu.memory_space<vmem>>) attributes {dimension_semantics = [#tpu.dimension_semantics<parallel>], iteration_bounds = array<i64: 1>, scalar_prefetch = 0 : i64, scratch_operands = 0 : i64, tpu.core_type = #tpu.core_type<tc>, window_params = [{transform_indices = @transform_0, window_bounds = array<i64: 8, 32>}, {pipeline_mode = #tpu.pipeline_mode<synchronous>, transform_indices = @transform_1, window_bounds = array<i64: 32, 32>}, {pipeline_mode = #tpu.pipeline_mode<synchronous>, transform_indices = @transform_2, window_bounds = array<i64: 1, 32>}, {transform_indices = @transform_3, window_bounds = array<i64: 8, 16>}, {transform_indices = @transform_4, window_bounds = array<i64: 8, 48>}]} {
    %c0 = arith.constant 0 : index
    %c0_0 = arith.constant 0 : index
    %0 = vector.load %arg1[%c0, %c0_0] : memref<8x32xf32, #tpu.memory_space<vmem>>, vector<8x32xf32>
    %c0_1 = arith.constant 0 : index
    %c0_2 = arith.constant 0 : index
    %1 = vector.load %arg2[%c0_1, %c0_2] : memref<32x32xf32, #tpu.memory_space<vmem>>, vector<32x32xf32>
    %cst = arith.constant dense<0.000000e+00> : vector<8x32xf32>
    %2 = tpu.matmul %0, %1, %cst {dimension_numbers = #tpu.dot_dimension_numbers<[1], [0], [0], [1], [0, 0, 1, 1], [], []>} : vector<8x32xf32>, vector<32x32xf32>, vector<8x32xf32> -> vector<8x32xf32>
    %c0_3 = arith.constant 0 : index
    %c0_4 = arith.constant 0 : index
    %3 = vector.load %arg3[%c0_3, %c0_4] : memref<1x32xf32, #tpu.memory_space<vmem>>, vector<1x32xf32>
    %4 = vector.broadcast %3 : vector<1x32xf32> to vector<8x32xf32>
    %5 = arith.addf %2, %4 : vector<8x32xf32>
    %6 = vector.extract_strided_slice %5 {offsets = [0, 0], sizes = [8, 16], strides = [1, 1]} : vector<8x32xf32> to vector<8x16xf32>
    %7 = vector.extract_strided_slice %5 {offsets = [0, 16], sizes = [8, 16], strides = [1, 1]} : vector<8x32xf32> to vector<8x16xf32>
    %cst_5 = arith.constant 5.000000e-01 : f32
    %8 = vector.broadcast %cst_5 : f32 to vector<8x16xf32>
    %9 = arith.mulf %8, %7 : vector<8x16xf32>
    %10 = math.exp %9 : vector<8x16xf32>
    %c0_6 = arith.constant 0 : index
    %c0_7 = arith.constant 0 : index
    %11 = vector.load %arg4[%c0_6, %c0_7] : memref<8x16xf32, #tpu.memory_space<vmem>>, vector<8x16xf32>
    %12 = arith.mulf %11, %10 : vector<8x16xf32>
    %13 = arith.addf %12, %6 : vector<8x16xf32>
    %c0_8 = arith.constant 0 : index
    %c0_9 = arith.constant 0 : index
    %14 = vector.load %arg5[%c0_8, %c0_9] : memref<8x48xf32, #tpu.memory_space<vmem>>, vector<8x32xf32>
    tpu.vector_store %arg5[%c0_8, %c0_9], %5 {strides = array<i32>} : memref<8x48xf32, #tpu.memory_space<vmem>>, vector<8x32xf32>,
    %c0_10 = arith.constant 0 : index
    %c32 = arith.constant 32 : index
    %15 = vector.load %arg5[%c0_10, %c32] : memref<8x48xf32, #tpu.memory_space<vmem>>, vector<8x16xf32>
    tpu.vector_store %arg5[%c0_10, %c32], %13 {strides = array<i32>} : memref<8x48xf32, #tpu.memory_space<vmem>>, vector<8x16xf32>,
    return
  }
  func.func @transform_0(%arg0: i32) -> (i32, i32) {
    %c0_i32 = arith.constant 0 : i32
    %c0_i32_0 = arith.constant 0 : i32
    return %arg0, %c0_i32 : i32, i32
  }
  func.func @transform_1(%arg0: i32) -> (i32, i32) {
    %c0_i32 = arith.constant 0 : i32
    %c0_i32_0 = arith.constant 0 : i32
    %c0_i32_1 = arith.constant 0 : i32
    return %c0_i32, %c0_i32_0 : i32, i32
  }
  func.func @transform_2(%arg0: i32) -> (i32, i32) {
    %c0_i32 = arith.constant 0 : i32
    %c0_i32_0 = arith.constant 0 : i32
    %c0_i32_1 = arith.constant 0 : i32
    return %c0_i32, %c0_i32_0 : i32, i32
  }
  func.func @transform_3(%arg0: i32) -> (i32, i32) {
    %c0_i32 = arith.constant 0 : i32
    %c0_i32_0 = arith.constant 0 : i32
    return %arg0, %c0_i32 : i32, i32
  }
  func.func @transform_4(%arg0: i32) -> (i32, i32) {
    %c0_i32 = arith.constant 0 : i32
    %c0_i32_0 = arith.constant 0 : i32
    return %arg0, %c0_i32 : i32, i32
  }
}

</mosaic_0001>

<bundles_post_ra>
// kernel: lambda_forward.1
= control target key start
LH: loop header
LB: loop body
LE: loop exit
PB: predicated region body
PF: predicated region fallthrough
CT: control target
= control target key end

     0   :  { %9 = vsyncpa [#allocation3], 0  ;;  %s349_s0 = inlined_call_operand.hbm [shape: f32[8,32], index: 0, kind: input, shape index: {}]   ;;  %s350_s1 = inlined_call_operand.hbm [shape: f32[32,32], index: 1, kind: input, shape index: {}]   ;;  %s351_s2 = inlined_call_operand.vmem [shape: f32[1,32], index: 2, kind: input, shape index: {}]   ;;  %s352_s3 = inlined_call_operand.hbm [shape: f32[8,16], index: 3, kind: input, shape index: {}]   ;;  %s353_s4 = inlined_call_operand.vmem [shape: f32[8,48], index: 4, kind: output, shape index: {}]  }
   0x1   :  { %10 = vsyncpa [#allocation5], 0  ;;  %s269_s15 = smov [#allocation4]   ;;  %s199_s19 = scalar_lea.hbm %s350_s1, 512 }
   0x2   :  { %s26_s16 = sshll.u32 %s269_s15, 4  ;;  %p200_p0 = scmp.ne.s32.totalorder %s350_s1, %s199_s19  ;;  %s27_s16 = int_to_ptr.vmem [resolvable:$true] %s26_s16 }
   0x3   :  { %p203_p1 = scmp.lt.u32.totalorder %s199_s19, %s350_s1 }
   0x5   :  { %p205_p2 = pnand %p203_p1, %p200_p0 }
   0x7   :  { %208 = shalt.err (!%p205_p2)
}
   0x8   :  { %s209_s24 = scalar_lea.vmem %s27_s16, 512  ;;  %p214_p4 = scmp.lt.s32.totalorder %s27_s16, %s27_s16 }
   0x9   :  { %p210_p3 = scmp.ne.s32.totalorder %s27_s16, %s209_s24  ;;  %p215_p5 = scmp.lt.s32.totalorder %s209_s24, %s209_s24 }
   0xb   :  { %p216_p6 = por %p215_p5, %p214_p4 }
   0xd   :  { %p217_p7 = pnand %p216_p6, %p210_p3 }
   0xf   :  { %220 = shalt.err (!%p217_p7)
}
  0x10   :  { %s270_s25 = smov 128   ;;  %s271_s26 = smov 8  }
  0x11   :  { %32 = dma.hbm_to_vmem [thread:$0]  %s350_s1, 512, %s27_s16, [#allocation5], %s270_s25, %s270_s25, %s271_s26  }
  0x12   :  { %s272_s29 = smov [#allocation2]   ;;  %s273_s5 = smov [#allocation6]  }
  0x13   :  { %s17_s30 = sshll.u32 %s272_s29, 4  ;;  %s41_s6 = sshll.u32 %s273_s5, 4  ;;  %s18_s30 = int_to_ptr.vmem [resolvable:$true] %s17_s30  ;;  %s42_s6 = int_to_ptr.vmem [resolvable:$true] %s41_s6 }
  0x14   :  { %s221_s9 = scalar_lea.hbm %s349_s0, 128 }
  0x15   :  { %p222_p8 = scmp.ne.s32.totalorder %s349_s0, %s221_s9  ;;  %p225_p9 = scmp.lt.u32.totalorder %s221_s9, %s349_s0 }
  0x17   :  { %p227_p10 = pnand %p225_p9, %p222_p8 }
  0x19   :  { %230 = shalt.err (!%p227_p10)
}
  0x1a   :  { %s231_s1 = scalar_lea.vmem %s18_s30, 128  ;;  %p236_p12 = scmp.lt.s32.totalorder %s18_s30, %s18_s30 }
  0x1b   :  { %p232_p11 = scmp.ne.s32.totalorder %s18_s30, %s231_s1  ;;  %p237_p13 = scmp.lt.s32.totalorder %s231_s1, %s231_s1 }
  0x1d   :  { %p238_p0 = por %p237_p13, %p236_p12 }
  0x1f   :  { %p239_p1 = pnand %p238_p0, %p232_p11 }
  0x21   :  { %242 = shalt.err (!%p239_p1)
}
  0x22   :  { %20 = dma.hbm_to_vmem [thread:$0]  %s349_s0, 128, %s18_s30, [#allocation3]  }
  0x23   :  { %s243_s18 = scalar_lea.hbm %s352_s3, 128 }
  0x24   :  { %p244_p2 = scmp.ne.s32.totalorder %s352_s3, %s243_s18  ;;  %p247_p3 = scmp.lt.u32.totalorder %s243_s18, %s352_s3 }
  0x26   :  { %p249_p4 = pnand %p247_p3, %p244_p2 }
  0x28   :  { %252 = shalt.err (!%p249_p4)
}
  0x29   :  { %s253_s23 = scalar_lea.vmem %s42_s6, 128  ;;  %p258_p6 = scmp.lt.s32.totalorder %s42_s6, %s42_s6 }
  0x2a   :  { %p254_p5 = scmp.ne.s32.totalorder %s42_s6, %s253_s23  ;;  %p259_p7 = scmp.lt.s32.totalorder %s253_s23, %s253_s23 }
  0x2c   :  { %p260_p8 = por %p259_p7, %p258_p6 }
  0x2e   :  { %p261_p9 = pnand %p260_p8, %p254_p5 }
  0x30   :  { %264 = shalt.err (!%p261_p9)
}
  0x31   :  { %44 = dma.hbm_to_vmem [thread:$0]  %s352_s3, 128, %s42_s6, [#allocation5]  }
  0x32   :  { %265 = dma.done.wait [#allocation3], 128  }
  0x33   :  { %266 = vsyncadd [#allocation3], 4294967168 }
  0x34   :  { %267 = dma.done.wait [#allocation5], 640  }
  0x35   :  { %268 = vsyncadd [#allocation5], 4294966656  ;;  %v274_v0 = vmov 0.0|0.0   ;;  %vm275_vm0 = vmmov 0   ;;  %v276_v1 = vmov 0.0   ;;  %v55_v2 = vld [vmem:[#allocation4] sm:$0xff] }
  0x36   :  { %181 = vmatprep.subr.bf16.mxu0 %v274_v0  ;;  %178 = vmatprep.mubr.msk.f32.mxu0 %vm275_vm0, %v276_v1  ;;  %v56_v3 = vld [vmem:[#allocation4 + $0x8] sm:$0xff]  ;;  %v57_v4 = vld [vmem:[#allocation4 + $0x10] sm:$0xff]  ;;  %v58_v6 = vld [vmem:[#allocation4 + $0x18] sm:$0xff]  ;;  %vm66_vm1 = vcmask 261120   ;;  %s277_s28 = smov 112   ;;  %s278_s29 = smov 32  }
  0x37   :  { %v182_v5 = vpack.c.bf16 %v56_v3, %v55_v2  ;;  %v185_v7 = vpack.c.bf16 %v58_v6, %v57_v4  ;;  %v54_v8 = vld [vmem:[#allocation2] sm:$0xff]  ;;  %v163_v9 = vld [vmem:[%s351_s2] ss:$0 sm:$0xff]  ;;  %v143_v16 = vld [vmem:[#allocation6] sm:$0xff]  ;;  %vm155_vm2 = vcmask 392448  }
  0x39   :  { %183 = vmatpush3.bf16.msra.mxu0 %v182_v5 }
  0x3a   :  { %184 = vmatprep.subr.bf16.mxu0 %v274_v0 }
  0x3d   :  { %186 = vmatpush3.bf16.msra.mxu0 %v185_v7 }
  0x40   :  { %179 = vmatmul.mubr.msk.f32.vlgmr.msra.gmra.mrb[0].mxu0 %vm66_vm1, %v54_v8 }
 0x113   :  { %v136_v10 = vpop.f32.mrb[0].mxu0 }
 0x114   :  { %v137_v11 = vadd.f32 %v163_v9, %v136_v10  ;;  %v180_v12 = vpop.f32.mrb[1].mxu0 }
 0x116   :  { %v140_v13 = vmul.f32 0.5, %v137_v11  ;;  %150 = vst.msk [vmem:[%s353_s4] sm:$0xff] %vm66_vm1, %v137_v11 }
 0x118   :  { %v141_v14 = vmul.f32 1.442695, %v140_v13 }
 0x11a   :  { %197 = vpow2.f32 %v141_v14 }
 0x124   :  { %v198_v15 = vpop.eup %197 }
 0x125   :  { %145 = vrot.lane.b32.xlu0 %v198_v15, %s277_s28 }
 0x197   :  { %v146_v17 = vpop.permute.xlu0 %145 }
 0x198   :  { %v148_v18 = vmul.f32 %v146_v17, %v143_v16 }
 0x19a   :  { %v149_v19 = vadd.f32 %v148_v18, %v137_v11 }
 0x19c   :  { %152 = vrot.lane.b32.xlu0 %v149_v19, %s278_s29 }
 0x20e   :  { %v153_v20 = vpop.permute.xlu0 %152 }
 0x20f   :  { %156 = vst.msk [vmem:[%s353_s4] sm:$0xff] %vm155_vm2, %v153_v20 }
 0x210   :  { %161 = vsyncpa [#allocation3], 1 }
 0x211   :  { %162 = vsyncpa [#allocation5], 1 }

</bundles_post_ra>
